<compile_context>
chip_gen: v6e
topology: v6e:2x2x1
jax: 0.10.0
libtpu: 0.0.40
codegen_flags: <defaults>
</compile_context>

<pallas_src>
import jax
import jax.numpy as jnp
from jax.experimental import pallas as pl
from jax.experimental.pallas import tpu as pltpu

# ---- parameters from ExampleNet.__init__ (compile-time constants) ----------
W1_00, W1_01 = -0.5, 0.5     # h0 = relu(W1_00*x0 + W1_01*x1 + B1_0)
W1_10, W1_11 = 1.0, 1.0      # h1 = relu(W1_10*x0 + W1_11*x1 + B1_1)
B1_0, B1_1 = 1.0, -1.0
W2_0, W2_1 = -1.0, 1.0       # y  = W2_0*h0 + W2_1*h1 + B2_0
B2_0 = -1.0

LANES = 128                  # vreg lane width
PAIRS = LANES // 2           # 64 batch rows per lane-dense view row
MAX_TB = 4096                # view rows per block -> 2 MiB in + 2 MiB out per block


def _mlp_kernel(x_ref, o_ref):
    """x_ref: (TB, 128) f32 with lanes [x0, x1, x0, x1, ...] (64 pairs per row).
    o_ref:  (TB, 128) f32; y(pair p) lands on even lane 2p (odd lanes are
    don't-care and are dropped by the wrapper)."""
    x = x_ref[...]

    # One-vreg probe of pltpu.roll's rotation direction so the even/odd pairing
    # below is correct under either convention. Pure XLU/VPU filler, hidden
    # under the HBM-bound pipeline.
    lane = jax.lax.broadcasted_iota(jnp.int32, (1, LANES), 1).astype(jnp.float32)
    d = pltpu.roll(lane, 1, 1) - lane
    rolls_to_higher = jnp.logical_or(d == -1.0, d == float(LANES - 1))

    # Bring each pair's partner (x1, sitting on the odd lane) onto the even lane.
    x_other = jnp.where(rolls_to_higher,
                        pltpu.roll(x, LANES - 1, 1),
                        pltpu.roll(x, 1, 1))

    # Entire forward pass as full-lane VPU FMAs (results meaningful on even lanes).
    h0 = jnp.maximum(x * W1_00 + x_other * W1_01 + B1_0, 0.0)
    h1 = jnp.maximum(x * W1_10 + x_other * W1_11 + B1_1, 0.0)
    o_ref[...] = h0 * W2_0 + h1 * W2_1 + B2_0


@jax.jit
def example_net_forward(x):
    """x: (B, 2) float32 -> (B, 1) float32, identical to the PyTorch module."""
    x = jnp.asarray(x, jnp.float32)
    B, f_in = x.shape
    assert f_in == 2

    # Pad the batch to a multiple of 64 only when needed, so the row-major (B, 2)
    # buffer reshapes FOR FREE into a lane-dense (rows, 128) view.
    rows = pl.cdiv(B, PAIRS)
    Bp = rows * PAIRS
    if Bp != B:
        x = jnp.pad(x, ((0, Bp - B), (0, 0)))   # skipped entirely when B % 64 == 0
    xl = x.reshape(rows, LANES)                 # free view, no data movement

    # Row tile: full extent for small inputs (always a legal block shape);
    # otherwise 4096 rows -> 2 MiB per buffer, 8 MiB live with double buffering,
    # which fits the scoped-VMEM defaults on v5e/v6e/v7x without tuning flags.
    tb = rows if rows <= MAX_TB else MAX_TB
    grid = (pl.cdiv(rows, tb),)                 # ragged last block is write-masked

    out = pl.pallas_call(
        _mlp_kernel,
        out_shape=jax.ShapeDtypeStruct((rows, LANES), jnp.float32),
        grid=grid,
        in_specs=[pl.BlockSpec((tb, LANES), lambda i: (i, 0))],
        out_specs=pl.BlockSpec((tb, LANES), lambda i: (i, 0)),
        compiler_params=pltpu.CompilerParams(
            dimension_semantics=("parallel",)),  # shard batch tiles across TCs
    )(xl)

    # Even lanes hold y; that is exactly column 0 of the natural (Bp, 2) view.
    return out.reshape(Bp, 2)[:B, 0:1]


def _reference(x):
    w1 = jnp.array([[W1_00, W1_01], [W1_10, W1_11]], jnp.float32)
    b1 = jnp.array([B1_0, B1_1], jnp.float32)
    w2 = jnp.array([[W2_0, W2_1]], jnp.float32)
    b2 = jnp.array([B2_0], jnp.float32)
    h = jnp.maximum(x @ w1.T + b1, 0.0)
    return h @ w2.T + b2


if __name__ == "__main__":
    key = jax.random.PRNGKey(0)
    key_a, key_b = jax.random.split(key)

    # Main check: batch=8, in_features=2 (as implied by Linear(2, 2)).
    x = jax.random.normal(key_a, (8, 2), dtype=jnp.float32)
    y = jax.block_until_ready(example_net_forward(x))
    assert y.shape == (8, 1), y.shape
    assert jnp.allclose(y, _reference(x), atol=1e-5, rtol=1e-5)

    # Extra check: batch not a multiple of 64 exercises the pad/slice path.
    x2 = jax.random.normal(key_b, (130, 2), dtype=jnp.float32)
    y2 = jax.block_until_ready(example_net_forward(x2))
    assert y2.shape == (130, 1), y2.shape
    assert jnp.allclose(y2, _reference(x2), atol=1e-5, rtol=1e-5)

    print("KERNEL_OK")
</pallas_src>

<mosaic_0001>
module attributes {stable_mosaic.version = 11 : i64} {
  func.func @_mlp_kernel(%arg0: i32, %arg1: memref<1x128xf32, #tpu.memory_space<vmem>>, %arg2: memref<1x128xf32, #tpu.memory_space<vmem>>) attributes {dimension_semantics = [#tpu.dimension_semantics<parallel>], iteration_bounds = array<i64: 1>, scalar_prefetch = 0 : i64, scratch_operands = 0 : i64, tpu.core_type = #tpu.core_type<tc>, window_params = [{transform_indices = @transform_0, window_bounds = array<i64: 1, 128>}, {transform_indices = @transform_1, window_bounds = array<i64: 1, 128>}]} {
    %c0 = arith.constant 0 : index
    %c0_0 = arith.constant 0 : index
    %0 = vector.load %arg1[%c0, %c0_0] : memref<1x128xf32, #tpu.memory_space<vmem>>, vector<1x128xf32>
    %1 = tpu.iota {dimensions = array<i32: 1>} : vector<1x128xi32>
    %2 = arith.sitofp %1 : vector<1x128xi32> to vector<1x128xf32>
    %c1_i32 = arith.constant 1 : i32
    %3 = tpu.dynamic_rotate %2 by %c1_i32 dim 1 : vector<1x128xf32>, i32 -> vector<1x128xf32>
    %4 = arith.subf %3, %2 : vector<1x128xf32>
    %cst = arith.constant -1.000000e+00 : f32
    %5 = vector.broadcast %cst : f32 to vector<1x128xf32>
    %6 = arith.cmpf oeq, %4, %5 : vector<1x128xf32>
    %cst_1 = arith.constant 1.270000e+02 : f32
    %7 = vector.broadcast %cst_1 : f32 to vector<1x128xf32>
    %8 = arith.cmpf oeq, %4, %7 : vector<1x128xf32>
    %9 = arith.ori %6, %8 : vector<1x128xi1>
    %c127_i32 = arith.constant 127 : i32
    %10 = tpu.dynamic_rotate %0 by %c127_i32 dim 1 : vector<1x128xf32>, i32 -> vector<1x128xf32>
    %c1_i32_2 = arith.constant 1 : i32
    %11 = tpu.dynamic_rotate %0 by %c1_i32_2 dim 1 : vector<1x128xf32>, i32 -> vector<1x128xf32>
    %12 = arith.select %9, %10, %11 : vector<1x128xi1>, vector<1x128xf32>
    %cst_3 = arith.constant -5.000000e-01 : f32
    %13 = vector.broadcast %cst_3 : f32 to vector<1x128xf32>
    %14 = arith.mulf %0, %13 : vector<1x128xf32>
    %cst_4 = arith.constant 5.000000e-01 : f32
    %15 = vector.broadcast %cst_4 : f32 to vector<1x128xf32>
    %16 = arith.mulf %12, %15 : vector<1x128xf32>
    %17 = arith.addf %14, %16 : vector<1x128xf32>
    %cst_5 = arith.constant 1.000000e+00 : f32
    %18 = vector.broadcast %cst_5 : f32 to vector<1x128xf32>
    %19 = arith.addf %17, %18 : vector<1x128xf32>
    %cst_6 = arith.constant 0.000000e+00 : f32
    %20 = vector.broadcast %cst_6 : f32 to vector<1x128xf32>
    %21 = arith.maximumf %19, %20 : vector<1x128xf32>
    %cst_7 = arith.constant 1.000000e+00 : f32
    %22 = vector.broadcast %cst_7 : f32 to vector<1x128xf32>
    %23 = arith.mulf %0, %22 : vector<1x128xf32>
    %cst_8 = arith.constant 1.000000e+00 : f32
    %24 = vector.broadcast %cst_8 : f32 to vector<1x128xf32>
    %25 = arith.mulf %12, %24 : vector<1x128xf32>
    %26 = arith.addf %23, %25 : vector<1x128xf32>
    %cst_9 = arith.constant -1.000000e+00 : f32
    %27 = vector.broadcast %cst_9 : f32 to vector<1x128xf32>
    %28 = arith.addf %26, %27 : vector<1x128xf32>
    %cst_10 = arith.constant 0.000000e+00 : f32
    %29 = vector.broadcast %cst_10 : f32 to vector<1x128xf32>
    %30 = arith.maximumf %28, %29 : vector<1x128xf32>
    %cst_11 = arith.constant -1.000000e+00 : f32
    %31 = vector.broadcast %cst_11 : f32 to vector<1x128xf32>
    %32 = arith.mulf %21, %31 : vector<1x128xf32>
    %cst_12 = arith.constant 1.000000e+00 : f32
    %33 = vector.broadcast %cst_12 : f32 to vector<1x128xf32>
    %34 = arith.mulf %30, %33 : vector<1x128xf32>
    %35 = arith.addf %32, %34 : vector<1x128xf32>
    %cst_13 = arith.constant -1.000000e+00 : f32
    %36 = vector.broadcast %cst_13 : f32 to vector<1x128xf32>
    %37 = arith.addf %35, %36 : vector<1x128xf32>
    %c0_14 = arith.constant 0 : index
    %c0_15 = arith.constant 0 : index
    %38 = vector.load %arg2[%c0_14, %c0_15] : memref<1x128xf32, #tpu.memory_space<vmem>>, vector<1x128xf32>
    tpu.vector_store %arg2[%c0_14, %c0_15], %37 {strides = array<i32>} : memref<1x128xf32, #tpu.memory_space<vmem>>, vector<1x128xf32>,
    return
  }
  func.func @transform_0(%arg0: i32) -> (i32, i32) {
    %c0_i32 = arith.constant 0 : i32
    %c0_i32_0 = arith.constant 0 : i32
    return %arg0, %c0_i32 : i32, i32
  }
  func.func @transform_1(%arg0: i32) -> (i32, i32) {
    %c0_i32 = arith.constant 0 : i32
    %c0_i32_0 = arith.constant 0 : i32
    return %arg0, %c0_i32 : i32, i32
  }
}

</mosaic_0001>

<bundles_post_ra>
// kernel: example_net_forward.1
= control target key start
LH: loop header
LB: loop body
LE: loop exit
PB: predicated region body
PF: predicated region fallthrough
CT: control target
= control target key end

     0   :  { %v9_v0 = vlaneseq  ;;  %s41_s8 = smov 1   ;;  %s42_s9 = smov 127   ;;  %s59_s0 = inlined_call_operand.vmem [shape: f32[1,128], index: 0, kind: input, shape index: {}]   ;;  %s60_s1 = inlined_call_operand.vmem [shape: f32[1,128], index: 1, kind: output, shape index: {}]  }
   0x1   :  { %v8_v1 = vld [vmem:[%s59_s0] sm:$0x1] }
   0x2   :  { %v10_v2 = vand.u32 127, %v9_v0  ;;  %20 = vrot.lane.b32.xlu1 %v8_v1, %s41_s8  ;;  %v23_v8 = vmul.f32 -0.5, %v8_v1 }
   0x4   :  { %v11_v3 = vcvt.s32.f32 %v10_v2 }
   0x6   :  { %12 = vrot.lane.b32.xlu0 %v11_v3, %s41_s8 }
   0xa   :  { %18 = vrot.lane.b32.xlu0 %v8_v1, %s42_s9 }
  0x74   :  { %v21_v6 = vpop.permute.xlu1 %20 }
  0x78   :  { %v13_v4 = vpop.permute.xlu0 %12 }
  0x79   :  { %v14_v5 = vsub.f32 %v13_v4, %v11_v3 }
  0x7b   :  { %vm15_vm0 = vcmp.eq.f32.partialorder %v14_v5, -1.0  ;;  %vm16_vm1 = vcmp.eq.f32.partialorder %v14_v5, 127.0 }
  0x7c   :  { %vm17_vm2 = vmor %vm15_vm0, %vm16_vm1  ;;  %v19_v7 = vpop.permute.xlu0 %18 }
  0x7d   :  { %v22_v9 = vsel %vm17_vm2, %v19_v7, %v21_v6 }
  0x7e   :  { %v24_v10 = vmul.f32 0.5, %v22_v9  ;;  %v28_v11 = vadd.f32 %v22_v9, %v8_v1 }
  0x80   :  { %v25_v12 = vadd.f32 %v24_v10, %v23_v8  ;;  %v29_v14 = vadd.f32 -1.0, %v28_v11 }
  0x82   :  { %v26_v13 = vadd.f32 1.0, %v25_v12  ;;  %v30_v16 = vmax.f32 %v29_v14, 0.0 }
  0x84   :  { %v27_v15 = vmax.f32 %v26_v13, 0.0 }
  0x86   :  { %v31_v17 = vmul.f32 -1.0, %v27_v15 }
  0x88   :  { %v32_v18 = vadd.f32 %v31_v17, %v30_v16 }
  0x8a   :  { %v33_v19 = vadd.f32 -1.0, %v32_v18 }
  0x8c   :  { %34 = vst [vmem:[%s60_s1] sm:$0x1] %v33_v19 }

</bundles_post_ra>
